<compile_context>
chip_gen: v7x
topology: tpu7x:2x2x1
jax: 0.10.0
libtpu: 0.0.40
codegen_flags: <defaults>
</compile_context>

<pallas_src>
import jax
import jax.numpy as jnp
from jax import lax
from jax.experimental import pallas as pl
from jax.experimental.pallas import tpu as pltpu


def _resblock2_kernel(x_ref, box_ref, wkqv_ref, wg_ref, out_ref):
    # One grid step == one attention branch.
    x = x_ref[...]                                   # [N, 512] f32
    x_bf = x.astype(jnp.bfloat16)
    box_bf = box_ref[...].astype(jnp.bfloat16)       # [N, 32]
    w_kqv = wkqv_ref[...]                            # [512, 768] bf16 (K|Q|V fused)
    w_g = wg_ref[...]                                # [32, 256]  bf16 (zero-padded rows)

    H = out_ref.shape[-1]                            # 256

    # Single wide MXU push for K|Q|V, f32 accumulation.
    kqv = jnp.dot(x_bf, w_kqv, preferred_element_type=jnp.float32)   # [N, 768]
    k = kqv[:, 0:H]
    q = kqv[:, H:2 * H]
    v = kqv[:, 2 * H:3 * H]
    g = jnp.dot(box_bf, w_g, preferred_element_type=jnp.float32)     # [N, 256]

    # WA = K @ Q^T / 16   (contract feature axes -> no transpose needed)
    wa = lax.dot_general(k, q, (((1,), (1,)), ((), ())),
                         preferred_element_type=jnp.float32) * (1.0 / 16.0)   # [N, N]
    # WG = relu(G @ G^T / 16)
    wgm = lax.dot_general(g, g, (((1,), (1,)), ((), ())),
                          preferred_element_type=jnp.float32) * (1.0 / 16.0)  # [N, N]
    wgm = jnp.maximum(wgm, 0.0)

    num = wgm * jnp.exp(wa)                                          # [N, N]
    # Global scalar normalization; reciprocal on the EUP slot.
    inv = pl.reciprocal(jnp.sum(num, keepdims=True), approx=True)    # [1, 1]
    fr = jnp.dot(num * inv, v, preferred_element_type=jnp.float32)   # [N, 256]

    # Residual: this branch's output occupies columns [b*256, (b+1)*256) of x.
    off = pl.multiple_of(pl.program_id(0) * H, H)
    x_half = x_ref[:, pl.ds(off, H)]                                  # [N, 256]
    out_ref[...] = (fr * 0.1 + x_half).astype(out_ref.dtype)


def resblock2_forward(x, box, w_kqv, w_g):
    """x: [N, 512] f32, box: [N, 22] f32.
    w_kqv: [2, 512, 768] bf16 (WK|WQ|WV fused per branch),
    w_g:   [2, 32, 256]  bf16 (fan-in zero-padded 22 -> 32)."""
    N, D = x.shape
    n_branch, _, three_h = w_kqv.shape
    H = three_h // 3                                 # 256
    box_dim = w_g.shape[1]                           # 32
    pad = box_dim - box.shape[1]
    box_p = jnp.pad(box, ((0, 0), (0, pad))) if pad else box

    in_specs = [
        pl.BlockSpec((N, D), lambda b: (0, 0)),                          # x (resident)
        pl.BlockSpec((N, box_dim), lambda b: (0, 0)),                    # box (resident)
        pl.BlockSpec((pl.Squeezed(), D, three_h), lambda b: (b, 0, 0)),  # fused KQV weights
        pl.BlockSpec((pl.Squeezed(), box_dim, H), lambda b: (b, 0, 0)),  # G weights
    ]
    out_specs = pl.BlockSpec((N, H), lambda b: (0, b))                   # lane-dense half

    return pl.pallas_call(
        _resblock2_kernel,
        out_shape=jax.ShapeDtypeStruct((N, D), x.dtype),
        grid=(n_branch,),
        in_specs=in_specs,
        out_specs=out_specs,
        compiler_params=pltpu.CompilerParams(
            dimension_semantics=("parallel",),       # branch-per-TensorCore on v7x
            vmem_limit_bytes=16 * 1024 * 1024,       # plenty of headroom on v5e/v6e/v7x
        ),
    )(x, box_p, w_kqv, w_g)


def init_params(key):
    """Deterministic init matching nn.Linear default (uniform +/- 1/sqrt(fan_in)).
    Weights stored pre-transposed as [in_features, out_features], f32 master copy."""
    params = {}
    specs = {
        "WG_1": (22, 256), "WK_1": (512, 256), "WQ_1": (512, 256), "WV_1": (512, 256),
        "WG_2": (22, 256), "WK_2": (512, 256), "WQ_2": (512, 256), "WV_2": (512, 256),
    }
    keys = jax.random.split(key, len(specs))
    for k, (name, (fan_in, fan_out)) in zip(keys, sorted(specs.items())):
        bound = 1.0 / (fan_in ** 0.5)
        params[name] = jax.random.uniform(
            k, (fan_in, fan_out), jnp.float32, minval=-bound, maxval=bound)
    return params


def pack_params(params, box_pad_to=32):
    """One-time packing: fuse WK|WQ|WV per branch, stack branches, pad WG fan-in,
    and store in bf16 (the streamed format the kernel consumes)."""
    def fuse_kqv(br):
        return jnp.concatenate(
            [params[f"WK_{br}"], params[f"WQ_{br}"], params[f"WV_{br}"]], axis=1)

    def pad_g(br):
        wg = params[f"WG_{br}"]
        return jnp.pad(wg, ((0, box_pad_to - wg.shape[0]), (0, 0)))

    w_kqv = jnp.stack([fuse_kqv(1), fuse_kqv(2)], axis=0).astype(jnp.bfloat16)  # [2,512,768]
    w_g = jnp.stack([pad_g(1), pad_g(2)], axis=0).astype(jnp.bfloat16)          # [2,32,256]
    return w_kqv, w_g


def _reference(x, box, w_kqv, w_g):
    """Pure-JAX f32 reference mirroring the PyTorch forward, using the same
    (bf16-stored) weight values the kernel consumes."""
    w_kqv = w_kqv.astype(jnp.float32)
    w_g = w_g.astype(jnp.float32)
    box_p = jnp.pad(box, ((0, 0), (0, w_g.shape[1] - box.shape[1])))
    H = w_kqv.shape[-1] // 3

    def branch(b):
        wk = w_kqv[b, :, 0:H]
        wq = w_kqv[b, :, H:2 * H]
        wv = w_kqv[b, :, 2 * H:3 * H]
        k = x @ wk
        q = x @ wq
        wa = (k @ q.T) / 16.0
        g = box_p @ w_g[b]
        wgm = jnp.maximum((g @ g.T) / 16.0, 0.0)
        num = wgm * jnp.exp(wa)
        return (num / jnp.sum(num)) @ (x @ wv)

    return jnp.concatenate([branch(0), branch(1)], axis=1) * 0.1 + x


if __name__ == "__main__":
    key = jax.random.PRNGKey(0)
    k_x, k_box, k_p = jax.random.split(key, 3)

    N = 8  # number of regions / nodes
    x = jax.random.normal(k_x, (N, 512), jnp.float32) * 0.1
    box = jax.random.normal(k_box, (N, 22), jnp.float32) * 0.1

    params = init_params(k_p)
    w_kqv, w_g = pack_params(params)          # done once; weights are static across calls

    fwd = jax.jit(resblock2_forward)
    out = jax.block_until_ready(fwd(x, box, w_kqv, w_g))

    ref = _reference(x, box, w_kqv, w_g)
    assert out.shape == (N, 512)
    assert jnp.allclose(out, ref, atol=5e-4, rtol=5e-4), "mismatch vs reference"

    print("KERNEL_OK")
</pallas_src>

<mosaic_0001>
module attributes {stable_mosaic.version = 11 : i64} {
  func.func @_resblock2_kernel(%arg0: i32, %arg1: memref<8x512xf32, #tpu.memory_space<vmem>>, %arg2: memref<8x32xf32, #tpu.memory_space<vmem>>, %arg3: memref<1x512x768xbf16, #tpu.memory_space<vmem>>, %arg4: memref<1x32x256xbf16, #tpu.memory_space<vmem>>, %arg5: memref<8x256xf32, #tpu.memory_space<vmem>>) attributes {dimension_semantics = [#tpu.dimension_semantics<parallel>], iteration_bounds = array<i64: 2>, scalar_prefetch = 0 : i64, scratch_operands = 0 : i64, tpu.core_type = #tpu.core_type<tc>, window_params = [{pipeline_mode = #tpu.pipeline_mode<synchronous>, transform_indices = @transform_0, window_bounds = array<i64: 8, 512>}, {pipeline_mode = #tpu.pipeline_mode<synchronous>, transform_indices = @transform_1, window_bounds = array<i64: 8, 32>}, {transform_indices = @transform_2, window_bounds = array<i64: 1, 512, 768>}, {transform_indices = @transform_3, window_bounds = array<i64: 1, 32, 256>}, {transform_indices = @transform_4, window_bounds = array<i64: 8, 256>}]} {
    %c0 = arith.constant 0 : index
    %c0_0 = arith.constant 0 : index
    %0 = vector.load %arg1[%c0, %c0_0] : memref<8x512xf32, #tpu.memory_space<vmem>>, vector<8x512xf32>
    %1 = arith.truncf %0 : vector<8x512xf32> to vector<8x512xbf16>
    %c0_1 = arith.constant 0 : index
    %c0_2 = arith.constant 0 : index
    %2 = vector.load %arg2[%c0_1, %c0_2] : memref<8x32xf32, #tpu.memory_space<vmem>>, vector<8x32xf32>
    %3 = arith.truncf %2 : vector<8x32xf32> to vector<8x32xbf16>
    %c0_3 = arith.constant 0 : index
    %c0_4 = arith.constant 0 : index
    %c0_5 = arith.constant 0 : index
    %4 = vector.load %arg3[%c0_3, %c0_4, %c0_5] : memref<1x512x768xbf16, #tpu.memory_space<vmem>>, vector<1x512x768xbf16>
    %5 = vector.shape_cast %4 : vector<1x512x768xbf16> to vector<512x768xbf16>
    %c0_6 = arith.constant 0 : index
    %c0_7 = arith.constant 0 : index
    %c0_8 = arith.constant 0 : index
    %6 = vector.load %arg4[%c0_6, %c0_7, %c0_8] : memref<1x32x256xbf16, #tpu.memory_space<vmem>>, vector<1x32x256xbf16>
    %7 = vector.shape_cast %6 : vector<1x32x256xbf16> to vector<32x256xbf16>
    %cst = arith.constant dense<0.000000e+00> : vector<8x768xf32>
    %8 = tpu.matmul %1, %5, %cst {dimension_numbers = #tpu.dot_dimension_numbers<[1], [0], [0], [1], [0, 0, 1, 1], [], []>} : vector<8x512xbf16>, vector<512x768xbf16>, vector<8x768xf32> -> vector<8x768xf32>
    %9 = vector.extract_strided_slice %8 {offsets = [0, 0], sizes = [8, 256], strides = [1, 1]} : vector<8x768xf32> to vector<8x256xf32>
    %10 = vector.extract_strided_slice %8 {offsets = [0, 256], sizes = [8, 256], strides = [1, 1]} : vector<8x768xf32> to vector<8x256xf32>
    %11 = vector.extract_strided_slice %8 {offsets = [0, 512], sizes = [8, 256], strides = [1, 1]} : vector<8x768xf32> to vector<8x256xf32>
    %cst_9 = arith.constant dense<0.000000e+00> : vector<8x256xf32>
    %12 = tpu.matmul %3, %7, %cst_9 {dimension_numbers = #tpu.dot_dimension_numbers<[1], [0], [0], [1], [0, 0, 1, 1], [], []>} : vector<8x32xbf16>, vector<32x256xbf16>, vector<8x256xf32> -> vector<8x256xf32>
    %cst_10 = arith.constant dense<0.000000e+00> : vector<8x8xf32>
    %13 = tpu.matmul %9, %10, %cst_10 {dimension_numbers = #tpu.dot_dimension_numbers<[1], [1], [0], [0], [0, 0, 1, 0], [], []>} : vector<8x256xf32>, vector<8x256xf32>, vector<8x8xf32> -> vector<8x8xf32>
    %cst_11 = arith.constant 6.250000e-02 : f32
    %14 = vector.broadcast %cst_11 : f32 to vector<8x8xf32>
    %15 = arith.mulf %13, %14 : vector<8x8xf32>
    %cst_12 = arith.constant dense<0.000000e+00> : vector<8x8xf32>
    %16 = tpu.matmul %12, %12, %cst_12 {dimension_numbers = #tpu.dot_dimension_numbers<[1], [1], [0], [0], [0, 0, 1, 0], [], []>} : vector<8x256xf32>, vector<8x256xf32>, vector<8x8xf32> -> vector<8x8xf32>
    %cst_13 = arith.constant 6.250000e-02 : f32
    %17 = vector.broadcast %cst_13 : f32 to vector<8x8xf32>
    %18 = arith.mulf %16, %17 : vector<8x8xf32>
    %cst_14 = arith.constant 0.000000e+00 : f32
    %19 = vector.broadcast %cst_14 : f32 to vector<8x8xf32>
    %20 = arith.maximumf %18, %19 : vector<8x8xf32>
    %21 = math.exp %15 : vector<8x8xf32>
    %22 = arith.mulf %20, %21 : vector<8x8xf32>
    %23 = vector.shape_cast %22 : vector<8x8xf32> to vector<1x8x8xf32>
    %cst_15 = arith.constant dense<0.000000e+00> : vector<1xf32>
    %24 = vector.multi_reduction <add>, %23, %cst_15 [1, 2] : vector<1x8x8xf32> to vector<1xf32>
    %25 = vector.shape_cast %24 : vector<1xf32> to vector<1x1x1xf32>
    %26 = vector.extract %25[0, 0, 0] : f32 from vector<1x1x1xf32>
    %27 = vector.broadcast %26 : f32 to vector<1x1xf32>
    %28 = tpu.reciprocal %27 {approx = true} : vector<1x1xf32> -> vector<1x1xf32>
    %29 = vector.broadcast %28 : vector<1x1xf32> to vector<8x8xf32>
    %30 = arith.mulf %22, %29 : vector<8x8xf32>
    %cst_16 = arith.constant dense<0.000000e+00> : vector<8x256xf32>
    %31 = tpu.matmul %30, %11, %cst_16 {dimension_numbers = #tpu.dot_dimension_numbers<[1], [0], [0], [1], [0, 0, 1, 1], [], []>} : vector<8x8xf32>, vector<8x256xf32>, vector<8x256xf32> -> vector<8x256xf32>
    %c256_i32 = arith.constant 256 : i32
    %32 = arith.muli %arg0, %c256_i32 : i32
    %33 = tpu.assume_multiple %32, 256 : i32
    %c0_17 = arith.constant 0 : index
    %34 = arith.index_cast %33 : i32 to index
    %35 = vector.load %arg1[%c0_17, %34] : memref<8x512xf32, #tpu.memory_space<vmem>>, vector<8x256xf32>
    %cst_18 = arith.constant 1.000000e-01 : f32
    %36 = vector.broadcast %cst_18 : f32 to vector<8x256xf32>
    %37 = arith.mulf %31, %36 : vector<8x256xf32>
    %38 = arith.addf %37, %35 : vector<8x256xf32>
    %c0_19 = arith.constant 0 : index
    %c0_20 = arith.constant 0 : index
    %39 = vector.load %arg5[%c0_19, %c0_20] : memref<8x256xf32, #tpu.memory_space<vmem>>, vector<8x256xf32>
    tpu.vector_store %arg5[%c0_19, %c0_20], %38 {strides = array<i32>} : memref<8x256xf32, #tpu.memory_space<vmem>>, vector<8x256xf32>,
    return
  }
  func.func @transform_0(%arg0: i32) -> (i32, i32) {
    %c0_i32 = arith.constant 0 : i32
    %c0_i32_0 = arith.constant 0 : i32
    %c0_i32_1 = arith.constant 0 : i32
    return %c0_i32, %c0_i32_0 : i32, i32
  }
  func.func @transform_1(%arg0: i32) -> (i32, i32) {
    %c0_i32 = arith.constant 0 : i32
    %c0_i32_0 = arith.constant 0 : i32
    %c0_i32_1 = arith.constant 0 : i32
    return %c0_i32, %c0_i32_0 : i32, i32
  }
  func.func @transform_2(%arg0: i32) -> (i32, i32, i32) {
    %c0_i32 = arith.constant 0 : i32
    %c0_i32_0 = arith.constant 0 : i32
    %c0_i32_1 = arith.constant 0 : i32
    return %arg0, %c0_i32, %c0_i32_0 : i32, i32, i32
  }
  func.func @transform_3(%arg0: i32) -> (i32, i32, i32) {
    %c0_i32 = arith.constant 0 : i32
    %c0_i32_0 = arith.constant 0 : i32
    %c0_i32_1 = arith.constant 0 : i32
    return %arg0, %c0_i32, %c0_i32_0 : i32, i32, i32
  }
  func.func @transform_4(%arg0: i32) -> (i32, i32) {
    %c0_i32 = arith.constant 0 : i32
    %c0_i32_0 = arith.constant 0 : i32
    return %c0_i32, %arg0 : i32, i32
  }
}

</mosaic_0001>

<bundles_post_ra>
// kernel: resblock2_forward.1
= control target key start
LH: loop header
LB: loop body
LE: loop exit
PB: predicated region body
PF: predicated region fallthrough
CT: control target
= control target key end

     0   :  { %s3373_s0 = inlined_call_operand.hbm [shape: f32[8,512], index: 0, kind: input, shape index: {}]   ;;  %s3374_s1 = inlined_call_operand.vmem [shape: f32[8,32], index: 1, kind: input, shape index: {}]   ;;  %s3375_s2 = inlined_call_operand.hbm [shape: bf16[2,512,768], index: 2, kind: input, shape index: {}]   ;;  %s3376_s3 = inlined_call_operand.hbm [shape: bf16[2,32,256], index: 3, kind: input, shape index: {}]   ;;  %s3377_s4 = inlined_call_operand.hbm [shape: f32[8,512], index: 4, kind: output, shape index: {}]  }
   0x1   :  { %3382 = sst [smem:[#allocation12_spill]] %s3375_s2 }
   0x2   :  { %9 = vsyncpa [#allocation3], 0 }
   0x3   :  { %10 = vsyncpa [#allocation6], 0 }
   0x4   :  { %12 = vsyncpa [#allocation6 + $0x1], 0 }
   0x5   :  { %13 = vsyncpa [#allocation4], 0 }
   0x6   :  { %15 = vsyncpa [#allocation4 + $0x1], 0  ;;  %s2906_s15 = smov 0   ;;  %s2908_s16 = smov 0  }
   0x7   :  { %s2910_s17 = smov 0   ;;  %s2912_s18 = smov 0  }
   0x8 LB: > { %s2927_s19 = sadd.s32 1, %s2869_s18   ;;  %s70_s20 = sadd.s32 1, %s2865_s17  ;;  %s2869_s18 = sphi %s2912_s18, %s3400_s18   ;;  %s2865_s17 = sphi %s2910_s17, %s3399_s17   ;;  %s2861_s16 = sphi %s2908_s16, %s3398_s16   ;;  %s2857_s15 = sphi %s2906_s15, %s3397_s15  }
   0x9   : > { %s67_s21 = ssub.s32 %s2869_s18, %s2927_s19  ;;  %p77_p0 = scmp.ne.s32.totalorder %s2865_s17, %s2861_s16 }
   0xa   : > { %p68_p1 = scmp.eq.s32.totalorder %s67_s21, 0  ;;  %p78_p2 = scmp.eq.s32.totalorder %s2869_s18, 0 }
   0xb   : > { %p2371_p4 = scmp.lt.s32.totalorder %s2869_s18, 2  ;;  %s173_s23 = sand.u32 1, %s2869_s18  }
   0xc   : > { %s2938_s22 = scalar_select %p68_p1, %s2865_s17, %s70_s20  }
   0xd   : > { %p79_p5 = por %p78_p2, %p77_p0  ;;  %s175_s24 = sand.u32 1, %s2865_s17  }
   0xe   : > { %s2340_s25 = smul.u32 1536, %s175_s24  ;;  %s3384_s2 = sld [smem:[#allocation12_spill]] }
   0xf   : > { %p2947_p6 = pnand %p2371_p4, %p79_p5  ;;  %s2341_s27 = smul.u32 24576, %s2869_s18 }
  0x10   : > { %s177_s5 = scalar_lea.vmem [#allocation5], %s2340_s25  ;;  %s2959_s7 = scalar_lea.sflag [#allocation6], %s173_s23 }
  0x11   : > { %s184_s6 = sshll.u32 %s177_s5, 4  ;;  %p2713_p8 = pneg %p2947_p6  ;;  %s2957_s6 = int_to_ptr.vmem [resolvable:$true] %s184_s6 }
  0x14   : > { %s2955_s30 = scalar_lea.hbm %s3384_s2, %s2341_s27  ;;  %s2716_s11 = scalar_lea.hbm %s3384_s2, 49152 }
  0x15   : > { %s2711_s8 = scalar_lea.hbm %s2955_s30, 24576  ;;  %p2717_p11 = scmp.lt.u32.totalorder %s2955_s30, %s3384_s2 }
  0x16   : > { %p2712_p7 = scmp.ne.s32.totalorder %s2955_s30, %s2711_s8  ;;  %p2718_p12 = scmp.lt.u32.totalorder %s2716_s11, %s2711_s8 }
  0x17   : > { %p2720_p1 = scmp.lt.u32.totalorder %s2711_s8, %s2955_s30 }
  0x18   : > { %p2714_p9 = pnand %p2713_p8, %p2712_p7  ;;  %p2719_p13 = por %p2718_p12, %p2717_p11 }
  0x1a   : > { %p2715_p10 = pneg %p2714_p9  ;;  %p2721_p2 = por %p2720_p1, %p2719_p13 }
  0x1c   : > { %p2722_p4 = pnand %p2721_p2, %p2715_p10 }
  0x1e   : > { %2725 = shalt.err (!%p2722_p4)
}
  0x1f   : > { %s2726_s14 = scalar_lea.vmem %s2957_s6, 24576  ;;  %s2871_s20 = smov [#allocation5]  }
  0x20   : > { %p2727_p5 = scmp.ne.s32.totalorder %s2957_s6, %s2726_s14  ;;  %s2731_s21 = sshll.u32 %s2871_s20, 4  ;;  %s2732_s21 = int_to_ptr.vmem [resolvable:$false] %s2731_s21 }
  0x21   : > { %s2733_s23 = scalar_lea.vmem %s2732_s21, 49152  ;;  %p2734_p3 = scmp.lt.s32.totalorder %s2957_s6, %s2732_s21 }
  0x22   : > { %p2729_p7 = pnand %p2727_p5, %p2713_p8  ;;  %p2735_p11 = scmp.lt.s32.totalorder %s2733_s23, %s2726_s14 }
  0x24   : > { %p2730_p9 = pneg %p2729_p7  ;;  %p2736_p12 = por %p2735_p11, %p2734_p3 }
  0x26   : > { %p2737_p13 = pnand %p2736_p12, %p2730_p9 }
  0x28   : > { %2740 = shalt.err (!%p2737_p13)
}
  0x29   : > { %s2872_s25 = smov 384   ;;  %s2873_s27 = smov 24  }
  0x2a   : > { %2362 = dma.hbm_to_vmem [thread:$0]  (!%p2947_p6), %s2955_s30, 24576, %s2957_s6, %s2959_s7, %s2872_s25, %s2872_s25, %s2873_s27  }
  0x2b   : > { %s2116_s28 = sshll.u32 %s175_s24, 5  ;;  %s2990_s29 = sadd.s32 4294967295, %s2869_s18  }
  0x2c   : > { %s2111_s5 = sadd.s32 4294967294, %s2869_s18   ;;  %p83_p3 = scmp.ne.s32.totalorder %s2861_s16, %s2857_s15 }
  0x2d   : > { %p3378_p10 = scmp.eq.s32.totalorder %s2990_s29, 0  ;;  %p133_p1 = scmp.eq.s32.totalorder %s2990_s29, 1 }
  0x2e   : > { %p139_p2 = scmp.eq.s32.totalorder %s2111_s5, 1  ;;  %p2112_p5 = scmp.ge.s32.totalorder %s2869_s18, 1 }
  0x2f   : > { %p2999_p4 = por %p3378_p10, %p83_p3  ;;  %p3007_p7 = por %p133_p1, %p77_p0 }
  0x30   : > { %p3011_p9 = por %p139_p2, %p83_p3  ;;  %p146_p11 = scmp.lt.s32.totalorder %s2869_s18, 3 }
  0x31   : > { %s3385_s8 = scalar_select %p2999_p4, 1, 0 }
  0x32   : > { %s3386_s24 = scalar_select %p3007_p7, 1, 0 }
  0x33   : > { %s3387_s30 = scalar_select %p3011_p9, 1, 0 }
  0x34   : > { %s2328_s6 = sshll.u32 %s2869_s18, 9  ;;  %p3017_p12 = pnand %p2112_p5, %p146_p11 }
  0x35   : > { %s2874_s10 = smov [#allocation2]   ;;  %s3026_s14 = scalar_lea.hbm %s3376_s3, %s2328_s6 }
  0x36   : > { %s3388_s9 = scalar_select %p3017_p12, 1, 0 }
  0x37   : > { %s159_s11 = sshll.u32 %s2874_s10, 4  ;;  %p2355_p0 = pneg %p3017_p12  ;;  %s3021_s11 = int_to_ptr.vmem [resolvable:$true] %s159_s11 }
  0x38   : > { %s198_s20 = scalar_lea.vmem [#allocation7], %s2116_s28  ;;  %s2741_s25 = scalar_lea.hbm %s3026_s14, 512 }
  0x39   : > { %s205_s21 = sshll.u32 %s198_s20, 4  ;;  %p3034_p13 = pnand %p2355_p0, %p3378_p10  ;;  %s3030_s21 = int_to_ptr.vmem [resolvable:$true] %s205_s21 }
  0x3a   : > { %p2742_p3 = scmp.ne.s32.totalorder %s3026_s14, %s2741_s25  ;;  %s2746_s6 = scalar_lea.hbm %s3376_s3, 1024 }
  0x3b   : > { %p2747_p5 = scmp.lt.u32.totalorder %s3026_s14, %s3376_s3  ;;  %p2748_p11 = scmp.lt.u32.totalorder %s2746_s6, %s2741_s25 }
  0x3c   : > { %p2744_p1 = pnand %p2742_p3, %p2713_p8  ;;  %p2750_p0 = scmp.lt.u32.totalorder %s2741_s25, %s3026_s14 }
  0x3d   : > { %p2749_p9 = por %p2748_p11, %p2747_p5 }
  0x3e   : > { %p2745_p2 = pneg %p2744_p1 }
  0x3f   : > { %p2751_p10 = por %p2750_p0, %p2749_p9 }
  0x41   : > { %p2752_p7 = pnand %p2751_p10, %p2745_p2 }
  0x43   : > { %2755 = shalt.err (!%p2752_p7)
}
  0x44   : > { %s2756_s12 = scalar_lea.vmem %s3030_s21, 512  ;;  %s2875_s13 = smov [#allocation7]  }
  0x45   : > { %p2757_p3 = scmp.ne.s32.totalorder %s3030_s21, %s2756_s12  ;;  %s2761_s20 = sshll.u32 %s2875_s13, 4  ;;  %s2762_s20 = int_to_ptr.vmem [resolvable:$false] %s2761_s20 }
  0x46   : > { %s2763_s27 = scalar_lea.vmem %s2762_s20, 1024  ;;  %p2764_p12 = scmp.lt.s32.totalorder %s3030_s21, %s2762_s20 }
  0x47   : > { %p2759_p1 = pnand %p2757_p3, %p2713_p8  ;;  %p2765_p5 = scmp.lt.s32.totalorder %s2763_s27, %s2756_s12 }
  0x49   : > { %p2760_p4 = pneg %p2759_p1  ;;  %p2766_p11 = por %p2765_p5, %p2764_p12 }
  0x4b   : > { %p2767_p9 = pnand %p2766_p11, %p2760_p4 }
  0x4d   : > { %2770 = shalt.err (!%p2767_p9)
}
  0x4e   : > { %s2876_s25 = smov 128   ;;  %s2877_s5 = smov 8  }
  0x4f   : > { %2365 = dma.hbm_to_vmem [thread:$0]  (!%p2947_p6), %s3026_s14, 512, %s3030_s21, %s2959_s7, %s2876_s25, %s2876_s25, %s2877_s5  }
  0x50   : > { %s2771_s28 = scalar_lea.hbm %s3373_s0, 512  ;;  %p2773_p10 = pneg %p3034_p13 }
  0x51   : > { %p2772_p8 = scmp.ne.s32.totalorder %s3373_s0, %s2771_s28  ;;  %p2778_p12 = scmp.lt.u32.totalorder %s2771_s28, %s3373_s0 }
  0x53   : > { %p2774_p4 = pnand %p2773_p10, %p2772_p8 }
  0x55   : > { %p2775_p7 = pneg %p2774_p4 }
  0x57   : > { %p2780_p2 = pnand %p2778_p12, %p2775_p7 }
  0x59   : > { %2783 = shalt.err (!%p2780_p2)
}
  0x5a   : > { %s2784_s26 = scalar_lea.vmem %s3021_s11, 512  ;;  %p2792_p1 = scmp.lt.s32.totalorder %s3021_s11, %s3021_s11 }
  0x5b   : > { %p2785_p6 = scmp.ne.s32.totalorder %s3021_s11, %s2784_s26  ;;  %p2793_p5 = scmp.lt.s32.totalorder %s2784_s26, %s2784_s26 }
  0x5d   : > { %p2787_p0 = pnand %p2785_p6, %p2773_p10  ;;  %p2794_p11 = por %p2793_p5, %p2792_p1 }
  0x5f   : > { %p2788_p3 = pneg %p2787_p0 }
  0x61   : > { %p2795_p9 = pnand %p2794_p11, %p2788_p3 }
  0x63   : > { %2798 = shalt.err (!%p2795_p9)
}
  0x64   : > { %2358 = dma.hbm_to_vmem [thread:$0]  (!%p3034_p13), %s3373_s0, 512, %s3021_s11, [#allocation3]  }
  0x65   : > { %p3390_p8 = scmp.ne.s32.totalorder %s3388_s9, 0 }
  0x66   : > { %p3391_p4 = scmp.eq.s32.totalorder (!%p3390_p8), %s2990_s29, 0 }
  0x67   : > { %217 = sbr.rel (%p3390_p8) target bundleno = 1205 (0x4b5), region = 36 }
  0x6e   : > { %2844 = dma.done.wait (%p3391_p4), [#allocation3], 512   ;;  %p3392_p10 = pmov %p3391_p4 }
  0x6f   : > { %s223_s14 = sand.u32 1, %s2990_s29   ;;  %s3091_s21 = sand.u32 1, %s2861_s16  }
  0x70   : > { %2846 = vsyncadd (%p3392_p10), [#allocation3], 4294966784  ;;  %s2342_s23 = smul.u32 1536, %s3091_s21  ;;  %s224_s27 = scalar_lea.sflag [#allocation6], %s223_s14 }
  0x71   : > { %p3393_p13 = scmp.ne.s32.totalorder %s3385_s8, 0 }
  0x72   : > { %s3094_s25 = scalar_lea.vmem [#allocation5], %s2342_s23 }
  0x73   : > { %2848 = dma.done.wait (%p3393_p13), %s224_s27, 25088  }
  0x74   : > { %2850 = vsyncadd (%p3393_p13), %s224_s27, 4294942208  ;;  %v2413_v0 = vld [vmem:[%s3094_s25 + $0x4] ss:$24 sps:$4 sm:$0xff]   ;;  %v2417_v2 = vld [vmem:[%s3094_s25] ss:$24 sps:$4 sm:$0xff]   ;;  %s2121_s8 = sshll.u32 %s3091_s21, 5 }
  0x75   : > { %v2415_v1 = vld [vmem:[%s3094_s25 + $0x304] ss:$24 sps:$4 sm:$0xff]   ;;  %1434 = vmatprep.subr.bf16.mxu1 %v2413_v0  ;;  %v2418_v3 = vld [vmem:[%s3094_s25 + $0x300] ss:$24 sps:$4 sm:$0xff]   ;;  %v2419_v4 = vld [vmem:[%s3094_s25 + $0x34] ss:$24 sps:$4 sm:$0xff]  }
  0x76   : > { %1475 = vmatprep.subr.bf16.mxu0 %v2415_v1  ;;  %1435 = vmatpush1.bf16.msra.mxu1 %v2417_v2  ;;  %v2421_v5 = vld [vmem:[%s3094_s25 + $0x334] ss:$24 sps:$4 sm:$0xff]   ;;  %v2423_v6 = vld [vmem:[%s3094_s25 + $0x30] ss:$24 sps:$4 sm:$0xff]   ;;  %v2425_v8 = vld [vmem:[%s3094_s25 + $0x64] ss:$24 sps:$4 sm:$0xff]  }
  0x77   : > { %1476 = vmatpush1.bf16.msra.mxu0 %v2418_v3  ;;  %1436 = vmatprep.subr.bf16.mxu1 %v2419_v4  ;;  %v2424_v7 = vld [vmem:[%s3094_s25 + $0x330] ss:$24 sps:$4 sm:$0xff]   ;;  %v2427_v9 = vld [vmem:[%s3094_s25 + $0x364] ss:$24 sps:$4 sm:$0xff]   ;;  %v2429_v10 = vld [vmem:[%s3094_s25 + $0x60] ss:$24 sps:$4 sm:$0xff]  }
  0x78   : > { %1477 = vmatprep.subr.bf16.mxu0 %v2421_v5  ;;  %v2430_v11 = vld [vmem:[%s3094_s25 + $0x360] ss:$24 sps:$4 sm:$0xff]   ;;  %v2431_v12 = vld [vmem:[%s3094_s25 + $0x94] ss:$24 sps:$4 sm:$0xff]   ;;  %v2435_v14 = vld [vmem:[%s3094_s25 + $0x90] ss:$24 sps:$4 sm:$0xff]  }
  0x79   : > { %v2433_v13 = vld [vmem:[%s3094_s25 + $0x394] ss:$24 sps:$4 sm:$0xff]   ;;  %v2436_v15 = vld [vmem:[%s3094_s25 + $0x390] ss:$24 sps:$4 sm:$0xff]   ;;  %v2437_v16 = vld [vmem:[%s3094_s25 + $0xc4] ss:$24 sps:$4 sm:$0xff]  }
  0x7a   : > { %1437 = vmatpush1.bf16.msra.mxu1 %v2423_v6  ;;  %v2439_v17 = vld [vmem:[%s3094_s25 + $0x3c4] ss:$24 sps:$4 sm:$0xff]   ;;  %v2441_v18 = vld [vmem:[%s3094_s25 + $0xc0] ss:$24 sps:$4 sm:$0xff]   ;;  %v2443_v20 = vld [vmem:[%s3094_s25 + $0xf4] ss:$24 sps:$4 sm:$0xff]  }
  0x7b   : > { %1478 = vmatpush1.bf16.msra.mxu0 %v2424_v7  ;;  %1438 = vmatprep.subr.bf16.mxu1 %v2425_v8  ;;  %v2442_v19 = vld [vmem:[%s3094_s25 + $0x3c0] ss:$24 sps:$4 sm:$0xff]   ;;  %v2445_v21 = vld [vmem:[%s3094_s25 + $0x3f4] ss:$24 sps:$4 sm:$0xff]   ;;  %v2447_v22 = vld [vmem:[%s3094_s25 + $0xf0] ss:$24 sps:$4 sm:$0xff]  }
  0x7c   : > { %1479 = vmatprep.subr.bf16.mxu0 %v2427_v9  ;;  %v2448_v23 = vld [vmem:[%s3094_s25 + $0x3f0] ss:$24 sps:$4 sm:$0xff]   ;;  %v2449_v24 = vld [vmem:[%s3094_s25 + $0x124] ss:$24 sps:$4 sm:$0xff]   ;;  %v2453_v26 = vld [vmem:[%s3094_s25 + $0x120] ss:$24 sps:$4 sm:$0xff]  }
  0x7d   : > { %v2451_v25 = vld [vmem:[%s3094_s25 + $0x424] ss:$24 sps:$4 sm:$0xff]   ;;  %v2454_v27 = vld [vmem:[%s3094_s25 + $0x420] ss:$24 sps:$4 sm:$0xff]   ;;  %v2455_v28 = vld [vmem:[%s3094_s25 + $0x154] ss:$24 sps:$4 sm:$0xff]  }
  0x7e   : > { %1439 = vmatpush1.bf16.msra.mxu1 %v2429_v10  ;;  %v2457_v29 = vld [vmem:[%s3094_s25 + $0x454] ss:$24 sps:$4 sm:$0xff]   ;;  %v2459_v30 = vld [vmem:[%s3094_s25 + $0x150] ss:$24 sps:$4 sm:$0xff]   ;;  %v2461_v32 = vld [vmem:[%s3094_s25 + $0x184] ss:$24 sps:$4 sm:$0xff]  }
  0x7f   : > { %1480 = vmatpush1.bf16.msra.mxu0 %v2430_v11  ;;  %1440 = vmatprep.subr.bf16.mxu1 %v2431_v12  ;;  %v2460_v31 = vld [vmem:[%s3094_s25 + $0x450] ss:$24 sps:$4 sm:$0xff]   ;;  %v2463_v33 = vld [vmem:[%s3094_s25 + $0x484] ss:$24 sps:$4 sm:$0xff]   ;;  %v2465_v34 = vld [vmem:[%s3094_s25 + $0x180] ss:$24 sps:$4 sm:$0xff]  }
  0x80   : > { %1481 = vmatprep.subr.bf16.mxu0 %v2433_v13  ;;  %v2466_v35 = vld [vmem:[%s3094_s25 + $0x480] ss:$24 sps:$4 sm:$0xff]   ;;  %v2467_v36 = vld [vmem:[%s3094_s25 + $0x1b4] ss:$24 sps:$4 sm:$0xff]   ;;  %v2471_v38 = vld [vmem:[%s3094_s25 + $0x1b0] ss:$24 sps:$4 sm:$0xff]  }
  0x81   : > { %v2469_v37 = vld [vmem:[%s3094_s25 + $0x4b4] ss:$24 sps:$4 sm:$0xff]   ;;  %v2472_v39 = vld [vmem:[%s3094_s25 + $0x4b0] ss:$24 sps:$4 sm:$0xff]   ;;  %v2473_v40 = vld [vmem:[%s3094_s25 + $0x1e4] ss:$24 sps:$4 sm:$0xff]  }
  0x82   : > { %1441 = vmatpush1.bf16.msra.mxu1 %v2435_v14  ;;  %v2475_v41 = vld [vmem:[%s3094_s25 + $0x4e4] ss:$24 sps:$4 sm:$0xff]   ;;  %v2477_v42 = vld [vmem:[%s3094_s25 + $0x1e0] ss:$24 sps:$4 sm:$0xff]   ;;  %v2479_v44 = vld [vmem:[%s3094_s25 + $0x214] ss:$24 sps:$4 sm:$0xff]  }
  0x83   : > { %1482 = vmatpush1.bf16.msra.mxu0 %v2436_v15  ;;  %1442 = vmatprep.subr.bf16.mxu1 %v2437_v16  ;;  %v2478_v43 = vld [vmem:[%s3094_s25 + $0x4e0] ss:$24 sps:$4 sm:$0xff]   ;;  %v2481_v45 = vld [vmem:[%s3094_s25 + $0x514] ss:$24 sps:$4 sm:$0xff]   ;;  %v2483_v47 = vld [vmem:[%s3094_s25 + $0x210] ss:$24 sps:$4 sm:$0xff]  }
  0x84   : > { %1483 = vmatprep.subr.bf16.mxu0 %v2439_v17  ;;  %v269_v46 = vld [vmem:[#allocation2 + $0x8] sm:$0xff]  ;;  %v271_v50 = vld [vmem:[#allocation2 + $0x18] sm:$0xff]  ;;  %v268_v4 = vld [vmem:[#allocation2] sm:$0xff]  ;;  %s3249_s9 = scalar_lea.vmem [#allocation7], %s2121_s8  ;;  %vm1700_vm0 = vcmask 261120   ;;  %vm1891_vm1 = vcmask 64512  }
  0x85   : > { %v2484_v48 = vld [vmem:[%s3094_s25 + $0x510] ss:$24 sps:$4 sm:$0xff]   ;;  %v3148_v49 = vpack.c.bf16 %v269_v46, %v269_v46  ;;  %v2485_v51 = vld [vmem:[%s3094_s25 + $0x244] ss:$24 sps:$4 sm:$0xff]   ;;  %v3151_v52 = vpack.c.bf16 %v271_v50, %v271_v50  ;;  %v2489_v54 = vld [vmem:[%s3094_s25 + $0x240] ss:$24 sps:$4 sm:$0xff]   ;;  %v3172_v8 = vpack.c.bf16 %v268_v4, %v268_v4 }
  0x86   : > { %1443 = vmatpush1.bf16.msra.mxu1 %v2441_v18  ;;  %v2487_v53 = vld [vmem:[%s3094_s25 + $0x544] ss:$24 sps:$4 sm:$0xff]   ;;  %v2490_v55 = vld [vmem:[%s3094_s25 + $0x540] ss:$24 sps:$4 sm:$0xff]   ;;  %v2491_v56 = vld [vmem:[%s3094_s25 + $0x274] ss:$24 sps:$4 sm:$0xff]  }
  0x87   : > { %1484 = vmatpush1.bf16.msra.mxu0 %v2442_v19  ;;  %1444 = vmatprep.subr.bf16.mxu1 %v2443_v20  ;;  %v2493_v57 = vld [vmem:[%s3094_s25 + $0x574] ss:$24 sps:$4 sm:$0xff]   ;;  %v2495_v58 = vld [vmem:[%s3094_s25 + $0x270] ss:$24 sps:$4 sm:$0xff]   ;;  %v2497_v60 = vld [vmem:[%s3094_s25 + $0x2a4] ss:$24 sps:$4 sm:$0xff]  }
  0x88   : > { %1485 = vmatprep.subr.bf16.mxu0 %v2445_v21  ;;  %1466 = vmatprep.mubr.bf16.mxu1 %v3148_v49  ;;  %v2496_v59 = vld [vmem:[%s3094_s25 + $0x570] ss:$24 sps:$4 sm:$0xff]   ;;  %v2499_v61 = vld [vmem:[%s3094_s25 + $0x5a4] ss:$24 sps:$4 sm:$0xff]   ;;  %v2501_v62 = vld [vmem:[%s3094_s25 + $0x2a0] ss:$24 sps:$4 sm:$0xff]  }
  0x89   : > { %1507 = vmatprep.mubr.bf16.mxu0 %v3151_v52  ;;  %v2502_v63 = vld [vmem:[%s3094_s25 + $0x5a0] ss:$24 sps:$4 sm:$0xff]   ;;  %v2503_v0 = vld [vmem:[%s3094_s25 + $0x2d4] ss:$24 sps:$4 sm:$0xff]   ;;  %v2507_v2 = vld [vmem:[%s3094_s25 + $0x2d0] ss:$24 sps:$4 sm:$0xff]  }
  0x8a   : > { %1445 = vmatpush1.bf16.msra.mxu1 %v2447_v22  ;;  %v2505_v1 = vld [vmem:[%s3094_s25 + $0x5d4] ss:$24 sps:$4 sm:$0xff]   ;;  %v2508_v3 = vld [vmem:[%s3094_s25 + $0x5d0] ss:$24 sps:$4 sm:$0xff]   ;;  %v2520_v13 = vld [vmem:[%s3094_s25 + $0x44] ss:$24 sps:$4 sm:$0xff]  }
  0x8b   : > { %1486 = vmatpush1.bf16.msra.mxu0 %v2448_v23  ;;  %1446 = vmatprep.subr.bf16.mxu1 %v2449_v24  ;;  %v270_v5 = vld [vmem:[#allocation2 + $0x10] sm:$0xff]  ;;  %v2511_v6 = vld [vmem:[%s3094_s25 + $0xc] ss:$24 sps:$4 sm:$0xff]   ;;  %v2509_v10 = vld [vmem:[%s3094_s25 + $0x8] ss:$24 sps:$4 sm:$0xff]   ;;  %s2321_s10 = sshll.u32 %s2990_s29, 8 }
  0x8c   : > { %1487 = vmatprep.subr.bf16.mxu0 %v2451_v25  ;;  %v2514_v7 = vld [vmem:[%s3094_s25 + $0x14] ss:$24 sps:$4 sm:$0xff]   ;;  %v3174_v9 = vpack.c.bf16 %v270_v5, %v270_v5  ;;  %v2512_v11 = vld [vmem:[%s3094_s25 + $0x10] ss:$24 sps:$4 sm:$0xff]   ;;  %v2518_v15 = vld [vmem:[%s3094_s25 + $0x40] ss:$24 sps:$4 sm:$0xff]   ;;  %s3329_s23 = scalar_lea.hbm %s3377_s4, %s2321_s10 }
  0x8d   : > { %v2517_v12 = vld [vmem:[%s3094_s25 + $0x3c] ss:$24 sps:$4 sm:$0xff]   ;;  %v2515_v14 = vld [vmem:[%s3094_s25 + $0x38] ss:$24 sps:$4 sm:$0xff]   ;;  %v2523_v16 = vld [vmem:[%s3094_s25 + $0x6c] ss:$24 sps:$4 sm:$0xff]  }
  0x8e   : > { %1447 = vmatpush1.bf16.msra.mxu1 %v2453_v26  ;;  %v2526_v17 = vld [vmem:[%s3094_s25 + $0x74] ss:$24 sps:$4 sm:$0xff]   ;;  %v2521_v18 = vld [vmem:[%s3094_s25 + $0x68] ss:$24 sps:$4 sm:$0xff]   ;;  %v2532_v21 = vld [vmem:[%s3094_s25 + $0xa4] ss:$24 sps:$4 sm:$0xff]  }
  0x8f   : > { %1488 = vmatpush1.bf16.msra.mxu0 %v2454_v27  ;;  %1448 = vmatprep.subr.bf16.mxu1 %v2455_v28  ;;  %v2524_v19 = vld [vmem:[%s3094_s25 + $0x70] ss:$24 sps:$4 sm:$0xff]   ;;  %v2529_v20 = vld [vmem:[%s3094_s25 + $0x9c] ss:$24 sps:$4 sm:$0xff]   ;;  %v2530_v23 = vld [vmem:[%s3094_s25 + $0xa0] ss:$24 sps:$4 sm:$0xff]  }
  0x90   : > { %1489 = vmatprep.subr.bf16.mxu0 %v2457_v29  ;;  %v2527_v22 = vld [vmem:[%s3094_s25 + $0x98] ss:$24 sps:$4 sm:$0xff]   ;;  %v2535_v24 = vld [vmem:[%s3094_s25 + $0xcc] ss:$24 sps:$4 sm:$0xff]   ;;  %v2533_v26 = vld [vmem:[%s3094_s25 + $0xc8] ss:$24 sps:$4 sm:$0xff]  }
  0x91   : > { %v2538_v25 = vld [vmem:[%s3094_s25 + $0xd4] ss:$24 sps:$4 sm:$0xff]   ;;  %v2536_v27 = vld [vmem:[%s3094_s25 + $0xd0] ss:$24 sps:$4 sm:$0xff]   ;;  %v2544_v29 = vld [vmem:[%s3094_s25 + $0x104] ss:$24 sps:$4 sm:$0xff]  }
  0x92   : > { %1449 = vmatpush1.bf16.msra.mxu1 %v2459_v30  ;;  %v2541_v28 = vld [vmem:[%s3094_s25 + $0xfc] ss:$24 sps:$4 sm:$0xff]   ;;  %v2539_v30 = vld [vmem:[%s3094_s25 + $0xf8] ss:$24 sps:$4 sm:$0xff]   ;;  %v2569_v50 = vld [vmem:[%s3094_s25 + $0x1e8] ss:$24 sps:$4 sm:$0xff]  }
  0x93   : > { %1490 = vmatpush1.bf16.msra.mxu0 %v2460_v31  ;;  %1450 = vmatprep.subr.bf16.mxu1 %v2461_v32  ;;  %v2542_v31 = vld [vmem:[%s3094_s25 + $0x100] ss:$24 sps:$4 sm:$0xff]   ;;  %v2547_v32 = vld [vmem:[%s3094_s25 + $0x12c] ss:$24 sps:$4 sm:$0xff]   ;;  %v2596_v4 = vld [vmem:[%s3094_s25 + $0x2b0] ss:$24 sps:$4 sm:$0xff]  }
  0x94   : > { %1491 = vmatprep.subr.bf16.mxu0 %v2463_v33  ;;  %v2550_v33 = vld [vmem:[%s3094_s25 + $0x134] ss:$24 sps:$4 sm:$0xff]   ;;  %v2563_v46 = vld [vmem:[%s3094_s25 + $0x1b8] ss:$24 sps:$4 sm:$0xff]   ;;  %s1980_s28 = sshra.s32 %s2321_s10, 7  ;;  %s2122_s12 = sshll.u32 %s3091_s21, 4 }
  0x95   : > { %v2601_v5 = vld [vmem:[%s3094_s25 + $0x2dc] ss:$24 sps:$4 sm:$0xff]   ;;  %s2322_s13 = sshll.u32 %s1980_s28, 3  ;;  %s265_s26 = scalar_lea.vmem [#allocation8], %s2122_s12 }
  0x96   : > { %1451 = vmatpush1.bf16.msra.mxu1 %v2465_v34  ;;  %v2545_v34 = vld [vmem:[%s3094_s25 + $0x128] ss:$24 sps:$4 sm:$0xff]   ;;  %s1983_s20 = scalar_lea.vmem [#allocation2], %s2322_s13  ;;  %s2007_s2 = sshll.u32 %s265_s26, 4  ;;  %s3331_s2 = int_to_ptr.vmem [resolvable:$true] %s2007_s2 }
  0x97   : > { %1492 = vmatpush1.bf16.msra.mxu0 %v2466_v35  ;;  %1452 = vmatprep.subr.bf16.mxu1 %v2467_v36  ;;  %v2548_v35 = vld [vmem:[%s3094_s25 + $0x130] ss:$24 sps:$4 sm:$0xff]   ;;  %v2553_v36 = vld [vmem:[%s3094_s25 + $0x15c] ss:$24 sps:$4 sm:$0xff]   ;;  %s1993_s29 = scalar_lea.sflag [#allocation4], %s3091_s21  ;;  %s2799_s27 = scalar_lea.vmem %s3331_s2, 256 }
  0x98   : > { %1493 = vmatprep.subr.bf16.mxu0 %v2469_v37  ;;  %v2556_v37 = vld [vmem:[%s3094_s25 + $0x164] ss:$24 sps:$4 sm:$0xff]   ;;  %p2800_p7 = scmp.ne.s32.totalorder %s3331_s2, %s2799_s27  ;;  %p3394_p12 = scmp.ne.s32.totalorder %s3386_s24, 0 }
  0x9a   : > { %1453 = vmatpush1.bf16.msra.mxu1 %v2471_v38  ;;  %v2551_v38 = vld [vmem:[%s3094_s25 + $0x158] ss:$24 sps:$4 sm:$0xff]   ;;  %p2801_p2 = pnand %p2800_p7, %p3394_p12 }
  0x9b   : > { %1494 = vmatpush1.bf16.msra.mxu0 %v2472_v39  ;;  %1454 = vmatprep.subr.bf16.mxu1 %v2473_v40  ;;  %v2554_v39 = vld [vmem:[%s3094_s25 + $0x160] ss:$24 sps:$4 sm:$0xff]   ;;  %v2559_v40 = vld [vmem:[%s3094_s25 + $0x18c] ss:$24 sps:$4 sm:$0xff]  }
  0x9c   : > { %1495 = vmatprep.subr.bf16.mxu0 %v2475_v41  ;;  %v2562_v41 = vld [vmem:[%s3094_s25 + $0x194] ss:$24 sps:$4 sm:$0xff]   ;;  %p2802_p6 = pneg %p2801_p2 }
  0x9e   : > { %1455 = vmatpush1.bf16.msra.mxu1 %v2477_v42  ;;  %v2557_v42 = vld [vmem:[%s3094_s25 + $0x188] ss:$24 sps:$4 sm:$0xff]  }
  0x9f   : > { %1496 = vmatpush1.bf16.msra.mxu0 %v2478_v43  ;;  %1456 = vmatprep.subr.bf16.mxu1 %v2479_v44  ;;  %v2560_v43 = vld [vmem:[%s3094_s25 + $0x190] ss:$24 sps:$4 sm:$0xff]   ;;  %v2565_v44 = vld [vmem:[%s3094_s25 + $0x1bc] ss:$24 sps:$4 sm:$0xff]  }
  0xa0   : > { %1497 = vmatprep.subr.bf16.mxu0 %v2481_v45  ;;  %v2568_v45 = vld [vmem:[%s3094_s25 + $0x1c4] ss:$24 sps:$4 sm:$0xff]  }
  0xa2   : > { %1457 = vmatpush1.bf16.msra.mxu1 %v2483_v47  ;;  %v2566_v47 = vld [vmem:[%s3094_s25 + $0x1c0] ss:$24 sps:$4 sm:$0xff]  }
  0xa3   : > { %1498 = vmatpush1.bf16.msra.mxu0 %v2484_v48  ;;  %1458 = vmatprep.subr.bf16.mxu1 %v2485_v51  ;;  %v2571_v48 = vld [vmem:[%s3094_s25 + $0x1ec] ss:$24 sps:$4 sm:$0xff]   ;;  %v2572_v51 = vld [vmem:[%s3094_s25 + $0x1f0] ss:$24 sps:$4 sm:$0xff]  }
  0xa4   : > { %1499 = vmatprep.subr.bf16.mxu0 %v2487_v53  ;;  %v2577_v53 = vld [vmem:[%s3094_s25 + $0x21c] ss:$24 sps:$4 sm:$0xff]  }
  0xa6   : > { %1459 = vmatpush1.bf16.msra.mxu1 %v2489_v54  ;;  %v2580_v54 = vld [vmem:[%s3094_s25 + $0x224] ss:$24 sps:$4 sm:$0xff]  }
  0xa7   : > { %1500 = vmatpush1.bf16.msra.mxu0 %v2490_v55  ;;  %1460 = vmatprep.subr.bf16.mxu1 %v2491_v56  ;;  %v2575_v55 = vld [vmem:[%s3094_s25 + $0x218] ss:$24 sps:$4 sm:$0xff]  }
  0xa8   : > { %1501 = vmatprep.subr.bf16.mxu0 %v2493_v57  ;;  %v2578_v56 = vld [vmem:[%s3094_s25 + $0x220] ss:$24 sps:$4 sm:$0xff]   ;;  %v2583_v57 = vld [vmem:[%s3094_s25 + $0x24c] ss:$24 sps:$4 sm:$0xff]  }
  0xaa   : > { %1461 = vmatpush1.bf16.msra.mxu1 %v2495_v58  ;;  %v2586_v58 = vld [vmem:[%s3094_s25 + $0x254] ss:$24 sps:$4 sm:$0xff]  }
  0xab   : > { %1502 = vmatpush1.bf16.msra.mxu0 %v2496_v59  ;;  %1462 = vmatprep.subr.bf16.mxu1 %v2497_v60  ;;  %v2581_v59 = vld [vmem:[%s3094_s25 + $0x248] ss:$24 sps:$4 sm:$0xff]  }
  0xac   : > { %1503 = vmatprep.subr.bf16.mxu0 %v2499_v61  ;;  %v2584_v60 = vld [vmem:[%s3094_s25 + $0x250] ss:$24 sps:$4 sm:$0xff]   ;;  %v2589_v61 = vld [vmem:[%s3094_s25 + $0x27c] ss:$24 sps:$4 sm:$0xff]  }
  0xae   : > { %1463 = vmatpush1.bf16.msra.mxu1 %v2501_v62  ;;  %v2592_v62 = vld [vmem:[%s3094_s25 + $0x284] ss:$24 sps:$4 sm:$0xff]  }
  0xaf   : > { %1504 = vmatpush1.bf16.msra.mxu0 %v2502_v63  ;;  %1464 = vmatprep.subr.bf16.mxu1 %v2503_v0  ;;  %v2587_v63 = vld [vmem:[%s3094_s25 + $0x278] ss:$24 sps:$4 sm:$0xff]  }
  0xb0   : > { %1505 = vmatprep.subr.bf16.mxu0 %v2505_v1  ;;  %v2590_v0 = vld [vmem:[%s3094_s25 + $0x280] ss:$24 sps:$4 sm:$0xff]   ;;  %v2595_v1 = vld [vmem:[%s3094_s25 + $0x2ac] ss:$24 sps:$4 sm:$0xff]  }
  0xb2   : > { %1465 = vmatpush1.bf16.msra.mxu1 %v2507_v2  ;;  %v2598_v2 = vld [vmem:[%s3094_s25 + $0x2b4] ss:$24 sps:$4 sm:$0xff]  }
  0xb3   : > { %1506 = vmatpush1.bf16.msra.mxu0 %v2508_v3  ;;  %1516 = vmatprep.subr.bf16.mxu1 %v2511_v6  ;;  %v2593_v3 = vld [vmem:[%s3094_s25 + $0x2a8] ss:$24 sps:$4 sm:$0xff]   ;;  %v2604_v6 = vld [vmem:[%s3094_s25 + $0x2e4] ss:$24 sps:$4 sm:$0xff]  }
  0xb4   : > { %1598 = vmatprep.subr.bf16.mxu0 %v2514_v7  ;;  %v2599_v7 = vld [vmem:[%s3094_s25 + $0x2d8] ss:$24 sps:$4 sm:$0xff]  }
  0xb5   : > { %1467 = vmatmul.mubr.bf16.vlgmr.msra.gmra.mrb[0].mxu1 %v3172_v8 }
  0xb6   : > { %1508 = vmatmul.mubr.bf16.vlgmr.msra.gmra.mrb[0].mxu0 %v3174_v9  ;;  %1517 = vmatpush1.bf16.msra.mxu1 %v2509_v10  ;;  %v2602_v10 = vld [vmem:[%s3094_s25 + $0x2e0] ss:$24 sps:$4 sm:$0xff]  }
  0xb7   : > { %1599 = vmatpush1.bf16.msra.mxu0 %v2512_v11  ;;  %1518 = vmatprep.subr.bf16.mxu1 %v2517_v12  ;;  %v2607_v11 = vld [vmem:[%s3094_s25 + $0x30c] ss:$24 sps:$4 sm:$0xff]  }
  0xb8   : > { %1600 = vmatprep.subr.bf16.mxu0 %v2520_v13  ;;  %1548 = vmatprep.mubr.bf16.mxu1 %v3148_v49  ;;  %v2610_v12 = vld [vmem:[%s3094_s25 + $0x314] ss:$24 sps:$4 sm:$0xff]   ;;  %v2605_v13 = vld [vmem:[%s3094_s25 + $0x308] ss:$24 sps:$4 sm:$0xff]  }
  0xb9   : > { %1630 = vmatprep.mubr.bf16.mxu0 %v3148_v49  ;;  %v2574_v49 = vld [vmem:[%s3094_s25 + $0x1f4] ss:$24 sps:$4 sm:$0xff]  }
  0xba   : > { %1519 = vmatpush1.bf16.msra.mxu1 %v2515_v14  ;;  %v2608_v14 = vld [vmem:[%s3094_s25 + $0x310] ss:$24 sps:$4 sm:$0xff]  }
  0xbb   : > { %1601 = vmatpush1.bf16.msra.mxu0 %v2518_v15  ;;  %1520 = vmatprep.subr.bf16.mxu1 %v2523_v16  ;;  %v2613_v15 = vld [vmem:[%s3094_s25 + $0x33c] ss:$24 sps:$4 sm:$0xff]  }
  0xbc   : > { %1602 = vmatprep.subr.bf16.mxu0 %v2526_v17  ;;  %v2616_v16 = vld [vmem:[%s3094_s25 + $0x344] ss:$24 sps:$4 sm:$0xff]   ;;  %v2611_v17 = vld [vmem:[%s3094_s25 + $0x338] ss:$24 sps:$4 sm:$0xff]  }
  0xbe   : > { %1521 = vmatpush1.bf16.msra.mxu1 %v2521_v18  ;;  %v2614_v18 = vld [vmem:[%s3094_s25 + $0x340] ss:$24 sps:$4 sm:$0xff]  }
  0xbf   : > { %1603 = vmatpush1.bf16.msra.mxu0 %v2524_v19  ;;  %1522 = vmatprep.subr.bf16.mxu1 %v2529_v20  ;;  %v2619_v19 = vld [vmem:[%s3094_s25 + $0x36c] ss:$24 sps:$4 sm:$0xff]  }
  0xc0   : > { %1604 = vmatprep.subr.bf16.mxu0 %v2532_v21  ;;  %v2622_v20 = vld [vmem:[%s3094_s25 + $0x374] ss:$24 sps:$4 sm:$0xff]   ;;  %v2620_v21 = vld [vmem:[%s3094_s25 + $0x370] ss:$24 sps:$4 sm:$0xff]  }
  0xc2   : > { %1523 = vmatpush1.bf16.msra.mxu1 %v2527_v22  ;;  %v2625_v22 = vld [vmem:[%s3094_s25 + $0x39c] ss:$24 sps:$4 sm:$0xff]  }
  0xc3   : > { %1605 = vmatpush1.bf16.msra.mxu0 %v2530_v23  ;;  %1524 = vmatprep.subr.bf16.mxu1 %v2535_v24  ;;  %v2628_v23 = vld [vmem:[%s3094_s25 + $0x3a4] ss:$24 sps:$4 sm:$0xff]   ;;  %v2623_v24 = vld [vmem:[%s3094_s25 + $0x398] ss:$24 sps:$4 sm:$0xff]  }
  0xc4   : > { %1606 = vmatprep.subr.bf16.mxu0 %v2538_v25  ;;  %v2626_v25 = vld [vmem:[%s3094_s25 + $0x3a0] ss:$24 sps:$4 sm:$0xff]  }
  0xc6   : > { %1525 = vmatpush1.bf16.msra.mxu1 %v2533_v26  ;;  %v2634_v26 = vld [vmem:[%s3094_s25 + $0x3d4] ss:$24 sps:$4 sm:$0xff]  }
  0xc7   : > { %1607 = vmatpush1.bf16.msra.mxu0 %v2536_v27  ;;  %1526 = vmatprep.subr.bf16.mxu1 %v2541_v28  ;;  %v2629_v27 = vld [vmem:[%s3094_s25 + $0x3c8] ss:$24 sps:$4 sm:$0xff]  }
  0xc8   : > { %1608 = vmatprep.subr.bf16.mxu0 %v2544_v29  ;;  %v2632_v28 = vld [vmem:[%s3094_s25 + $0x3d0] ss:$24 sps:$4 sm:$0xff]   ;;  %v2637_v29 = vld [vmem:[%s3094_s25 + $0x3fc] ss:$24 sps:$4 sm:$0xff]  }
  0xca   : > { %1527 = vmatpush1.bf16.msra.mxu1 %v2539_v30  ;;  %v2640_v30 = vld [vmem:[%s3094_s25 + $0x404] ss:$24 sps:$4 sm:$0xff]  }
  0xcb   : > { %1609 = vmatpush1.bf16.msra.mxu0 %v2542_v31  ;;  %1528 = vmatprep.subr.bf16.mxu1 %v2547_v32  ;;  %v2635_v31 = vld [vmem:[%s3094_s25 + $0x3f8] ss:$24 sps:$4 sm:$0xff]  }
  0xcc   : > { %1610 = vmatprep.subr.bf16.mxu0 %v2550_v33  ;;  %v2638_v32 = vld [vmem:[%s3094_s25 + $0x400] ss:$24 sps:$4 sm:$0xff]   ;;  %v2643_v33 = vld [vmem:[%s3094_s25 + $0x42c] ss:$24 sps:$4 sm:$0xff]  }
  0xce   : > { %1529 = vmatpush1.bf16.msra.mxu1 %v2545_v34  ;;  %v2646_v34 = vld [vmem:[%s3094_s25 + $0x434] ss:$24 sps:$4 sm:$0xff]  }
  0xcf   : > { %1611 = vmatpush1.bf16.msra.mxu0 %v2548_v35  ;;  %1530 = vmatprep.subr.bf16.mxu1 %v2553_v36  ;;  %v2641_v35 = vld [vmem:[%s3094_s25 + $0x428] ss:$24 sps:$4 sm:$0xff]  }
  0xd0   : > { %1612 = vmatprep.subr.bf16.mxu0 %v2556_v37  ;;  %v2644_v36 = vld [vmem:[%s3094_s25 + $0x430] ss:$24 sps:$4 sm:$0xff]   ;;  %v2649_v37 = vld [vmem:[%s3094_s25 + $0x45c] ss:$24 sps:$4 sm:$0xff]  }
  0xd2   : > { %1531 = vmatpush1.bf16.msra.mxu1 %v2551_v38  ;;  %v2652_v38 = vld [vmem:[%s3094_s25 + $0x464] ss:$24 sps:$4 sm:$0xff]  }
  0xd3   : > { %1613 = vmatpush1.bf16.msra.mxu0 %v2554_v39  ;;  %1532 = vmatprep.subr.bf16.mxu1 %v2559_v40  ;;  %v2647_v39 = vld [vmem:[%s3094_s25 + $0x458] ss:$24 sps:$4 sm:$0xff]  }
  0xd4   : > { %1614 = vmatprep.subr.bf16.mxu0 %v2562_v41  ;;  %v2650_v40 = vld [vmem:[%s3094_s25 + $0x460] ss:$24 sps:$4 sm:$0xff]   ;;  %v2655_v41 = vld [vmem:[%s3094_s25 + $0x48c] ss:$24 sps:$4 sm:$0xff]  }
  0xd6   : > { %1533 = vmatpush1.bf16.msra.mxu1 %v2557_v42  ;;  %v2658_v42 = vld [vmem:[%s3094_s25 + $0x494] ss:$24 sps:$4 sm:$0xff]  }
  0xd7   : > { %1615 = vmatpush1.bf16.msra.mxu0 %v2560_v43  ;;  %1534 = vmatprep.subr.bf16.mxu1 %v2565_v44  ;;  %v2653_v43 = vld [vmem:[%s3094_s25 + $0x488] ss:$24 sps:$4 sm:$0xff]  }
  0xd8   : > { %1616 = vmatprep.subr.bf16.mxu0 %v2568_v45  ;;  %v2656_v44 = vld [vmem:[%s3094_s25 + $0x490] ss:$24 sps:$4 sm:$0xff]   ;;  %v2661_v45 = vld [vmem:[%s3094_s25 + $0x4bc] ss:$24 sps:$4 sm:$0xff]  }
  0xda   : > { %1535 = vmatpush1.bf16.msra.mxu1 %v2563_v46  ;;  %v2664_v46 = vld [vmem:[%s3094_s25 + $0x4c4] ss:$24 sps:$4 sm:$0xff]  }
  0xdb   : > { %1617 = vmatpush1.bf16.msra.mxu0 %v2566_v47  ;;  %1536 = vmatprep.subr.bf16.mxu1 %v2571_v48  ;;  %v2659_v47 = vld [vmem:[%s3094_s25 + $0x4b8] ss:$24 sps:$4 sm:$0xff]  }
  0xdc   : > { %1618 = vmatprep.subr.bf16.mxu0 %v2574_v49  ;;  %v2662_v48 = vld [vmem:[%s3094_s25 + $0x4c0] ss:$24 sps:$4 sm:$0xff]   ;;  %v2667_v49 = vld [vmem:[%s3094_s25 + $0x4ec] ss:$24 sps:$4 sm:$0xff]  }
  0xde   : > { %1537 = vmatpush1.bf16.msra.mxu1 %v2569_v50  ;;  %v2670_v50 = vld [vmem:[%s3094_s25 + $0x4f4] ss:$24 sps:$4 sm:$0xff]  }
  0xdf   : > { %1619 = vmatpush1.bf16.msra.mxu0 %v2572_v51  ;;  %1538 = vmatprep.subr.bf16.mxu1 %v2577_v53  ;;  %v2665_v51 = vld [vmem:[%s3094_s25 + $0x4e8] ss:$24 sps:$4 sm:$0xff]  }
  0xe0   : > { %1620 = vmatprep.subr.bf16.mxu0 %v2580_v54  ;;  %v2668_v53 = vld [vmem:[%s3094_s25 + $0x4f0] ss:$24 sps:$4 sm:$0xff]   ;;  %v2673_v54 = vld [vmem:[%s3094_s25 + $0x51c] ss:$24 sps:$4 sm:$0xff]  }
  0xe2   : > { %1539 = vmatpush1.bf16.msra.mxu1 %v2575_v55  ;;  %v2676_v55 = vld [vmem:[%s3094_s25 + $0x524] ss:$24 sps:$4 sm:$0xff]  }
  0xe3   : > { %1621 = vmatpush1.bf16.msra.mxu0 %v2578_v56  ;;  %1540 = vmatprep.subr.bf16.mxu1 %v2583_v57  ;;  %v2671_v56 = vld [vmem:[%s3094_s25 + $0x518] ss:$24 sps:$4 sm:$0xff]  }
  0xe4   : > { %1622 = vmatprep.subr.bf16.mxu0 %v2586_v58  ;;  %v2674_v57 = vld [vmem:[%s3094_s25 + $0x520] ss:$24 sps:$4 sm:$0xff]   ;;  %v2679_v58 = vld [vmem:[%s3094_s25 + $0x54c] ss:$24 sps:$4 sm:$0xff]  }
  0xe6   : > { %1541 = vmatpush1.bf16.msra.mxu1 %v2581_v59  ;;  %v2682_v59 = vld [vmem:[%s3094_s25 + $0x554] ss:$24 sps:$4 sm:$0xff]  }
  0xe7   : > { %1623 = vmatpush1.bf16.msra.mxu0 %v2584_v60  ;;  %1542 = vmatprep.subr.bf16.mxu1 %v2589_v61  ;;  %v2677_v60 = vld [vmem:[%s3094_s25 + $0x548] ss:$24 sps:$4 sm:$0xff]  }
  0xe8   : > { %1624 = vmatprep.subr.bf16.mxu0 %v2592_v62  ;;  %v2680_v61 = vld [vmem:[%s3094_s25 + $0x550] ss:$24 sps:$4 sm:$0xff]   ;;  %v2685_v62 = vld [vmem:[%s3094_s25 + $0x57c] ss:$24 sps:$4 sm:$0xff]  }
  0xea   : > { %1543 = vmatpush1.bf16.msra.mxu1 %v2587_v63  ;;  %v2688_v63 = vld [vmem:[%s3094_s25 + $0x584] ss:$24 sps:$4 sm:$0xff]  }
  0xeb   : > { %1625 = vmatpush1.bf16.msra.mxu0 %v2590_v0  ;;  %1544 = vmatprep.subr.bf16.mxu1 %v2595_v1  ;;  %v2683_v0 = vld [vmem:[%s3094_s25 + $0x578] ss:$24 sps:$4 sm:$0xff]  }
  0xec   : > { %1626 = vmatprep.subr.bf16.mxu0 %v2598_v2  ;;  %v2686_v1 = vld [vmem:[%s3094_s25 + $0x580] ss:$24 sps:$4 sm:$0xff]   ;;  %v2691_v2 = vld [vmem:[%s3094_s25 + $0x5ac] ss:$24 sps:$4 sm:$0xff]  }
  0xee   : > { %1545 = vmatpush1.bf16.msra.mxu1 %v2593_v3  ;;  %v2694_v3 = vld [vmem:[%s3094_s25 + $0x5b4] ss:$24 sps:$4 sm:$0xff]  }
  0xef   : > { %1627 = vmatpush1.bf16.msra.mxu0 %v2596_v4  ;;  %1546 = vmatprep.subr.bf16.mxu1 %v2601_v5  ;;  %v2689_v4 = vld [vmem:[%s3094_s25 + $0x5a8] ss:$24 sps:$4 sm:$0xff]  }
  0xf0   : > { %1628 = vmatprep.subr.bf16.mxu0 %v2604_v6  ;;  %v2692_v5 = vld [vmem:[%s3094_s25 + $0x5b0] ss:$24 sps:$4 sm:$0xff]   ;;  %v2697_v6 = vld [vmem:[%s3094_s25 + $0x5dc] ss:$24 sps:$4 sm:$0xff]  }
  0xf2   : > { %1547 = vmatpush1.bf16.msra.mxu1 %v2599_v7  ;;  %v2700_v7 = vld [vmem:[%s3094_s25 + $0x5e4] ss:$24 sps:$4 sm:$0xff]  }
  0xf3   : > { %1629 = vmatpush1.bf16.msra.mxu0 %v2602_v10  ;;  %1557 = vmatprep.subr.bf16.mxu1 %v2607_v11  ;;  %v2695_v10 = vld [vmem:[%s3094_s25 + $0x5d8] ss:$24 sps:$4 sm:$0xff]  }
  0xf4   : > { %1639 = vmatprep.subr.bf16.mxu0 %v2610_v12  ;;  %v2698_v11 = vld [vmem:[%s3094_s25 + $0x5e0] ss:$24 sps:$4 sm:$0xff]   ;;  %v2703_v12 = vld [vmem:[%s3249_s9 + $0x4] ss:$8 sps:$4 sm:$0xff]  }
  0xf5   : > { %1549 = vmatmul.mubr.bf16.vlgmr.msra.gmra.mrb[4].mxu1 %v3172_v8 }
  0xf6   : > { %1631 = vmatmul.mubr.bf16.vlgmr.msra.gmra.mrb[4].mxu0 %v3172_v8  ;;  %1558 = vmatpush1.bf16.msra.mxu1 %v2605_v13  ;;  %v2617_v8 = vld [vmem:[%s3094_s25 + $0x368] ss:$24 sps:$4 sm:$0xff]  }
  0xf7   : > { %1640 = vmatpush1.bf16.msra.mxu0 %v2608_v14  ;;  %1559 = vmatprep.subr.bf16.mxu1 %v2613_v15  ;;  %v2701_v13 = vld [vmem:[%s3249_s9] ss:$8 sps:$4 sm:$0xff]   ;;  %v2706_v14 = vld [vmem:[%s3249_s9 + $0x14] ss:$8 sps:$4 sm:$0xff]   ;;  %v2704_v15 = vld [vmem:[%s3249_s9 + $0x10] ss:$8 sps:$4 sm:$0xff]  }
  0xf8   : > { %1641 = vmatprep.subr.bf16.mxu0 %v2616_v16  ;;  %1589 = vmatprep.mubr.bf16.mxu1 %v3151_v52  ;;  %v2878_v16 = vmov 0  }
  0xf9   : > { %1671 = vmatprep.mubr.bf16.mxu0 %v3151_v52  ;;  %v2631_v52 = vld [vmem:[%s3094_s25 + $0x3cc] ss:$24 sps:$4 sm:$0xff]   ;;  %s2880_s25 = smov [#allocation8]  }
  0xfa   : > { %1560 = vmatpush1.bf16.msra.mxu1 %v2611_v17  ;;  %v276_v17 = vld [vmem:[%s3374_s1] sm:$0xff]  ;;  %s2803_s8 = sshll.u32 %s2880_s25, 4  ;;  %s2804_s8 = int_to_ptr.vmem [resolvable:$false] %s2803_s8 }
  0xfb   : > { %1642 = vmatpush1.bf16.msra.mxu0 %v2614_v18  ;;  %1561 = vmatprep.subr.bf16.mxu1 %v2619_v19  ;;  %v277_v18 = vpack.c.bf16 %v276_v17, %v276_v17  ;;  %s2805_s9 = scalar_lea.vmem %s2804_s8, 512  ;;  %p2806_p0 = scmp.lt.s32.totalorder %s3331_s2, %s2804_s8 }
  0xfc   : > { %1643 = vmatprep.subr.bf16.mxu0 %v2622_v20  ;;  %p2807_p3 = scmp.lt.s32.totalorder %s2805_s9, %s2799_s27 }
  0xfe   : > { %1562 = vmatpush1.bf16.msra.mxu1 %v2617_v8  ;;  %p2808_p1 = por %p2807_p3, %p2806_p0 }
  0xff   : > { %1644 = vmatpush1.bf16.msra.mxu0 %v2620_v21  ;;  %1563 = vmatprep.subr.bf16.mxu1 %v2625_v22 }
 0x100   : > { %1645 = vmatprep.subr.bf16.mxu0 %v2628_v23  ;;  %p2809_p5 = pnand %p2808_p1, %p2802_p6 }
 0x102   : > { %1564 = vmatpush1.bf16.msra.mxu1 %v2623_v24 }
 0x103   : > { %1646 = vmatpush1.bf16.msra.mxu0 %v2626_v25  ;;  %1565 = vmatprep.subr.bf16.mxu1 %v2631_v52 }
 0x104   : > { %1647 = vmatprep.subr.bf16.mxu0 %v2634_v26 }
 0x106   : > { %1566 = vmatpush1.bf16.msra.mxu1 %v2629_v27 }
 0x107   : > { %1648 = vmatpush1.bf16.msra.mxu0 %v2632_v28  ;;  %1567 = vmatprep.subr.bf16.mxu1 %v2637_v29 }
 0x108   : > { %1649 = vmatprep.subr.bf16.mxu0 %v2640_v30 }
 0x10a   : > { %1568 = vmatpush1.bf16.msra.mxu1 %v2635_v31 }
 0x10b   : > { %1650 = vmatpush1.bf16.msra.mxu0 %v2638_v32  ;;  %1569 = vmatprep.subr.bf16.mxu1 %v2643_v33 }
 0x10c   : > { %1651 = vmatprep.subr.bf16.mxu0 %v2646_v34 }
 0x10e   : > { %1570 = vmatpush1.bf16.msra.mxu1 %v2641_v35 }
 0x10f   : > { %1652 = vmatpush1.bf16.msra.mxu0 %v2644_v36  ;;  %1571 = vmatprep.subr.bf16.mxu1 %v2649_v37 }
 0x110   : > { %1653 = vmatprep.subr.bf16.mxu0 %v2652_v38 }
 0x112   : > { %1572 = vmatpush1.bf16.msra.mxu1 %v2647_v39 }
 0x113   : > { %1654 = vmatpush1.bf16.msra.mxu0 %v2650_v40  ;;  %1573 = vmatprep.subr.bf16.mxu1 %v2655_v41 }
 0x114   : > { %1655 = vmatprep.subr.bf16.mxu0 %v2658_v42 }
 0x116   : > { %1574 = vmatpush1.bf16.msra.mxu1 %v2653_v43 }
 0x117   : > { %1656 = vmatpush1.bf16.msra.mxu0 %v2656_v44  ;;  %1575 = vmatprep.subr.bf16.mxu1 %v2661_v45 }
 0x118   : > { %1657 = vmatprep.subr.bf16.mxu0 %v2664_v46 }
 0x11a   : > { %1576 = vmatpush1.bf16.msra.mxu1 %v2659_v47 }
 0x11b   : > { %1658 = vmatpush1.bf16.msra.mxu0 %v2662_v48  ;;  %1577 = vmatprep.subr.bf16.mxu1 %v2667_v49  ;;  %v2879_v49 = vmov 0.0  }
 0x11c   : > { %1659 = vmatprep.subr.bf16.mxu0 %v2670_v50 }
 0x11e   : > { %1578 = vmatpush1.bf16.msra.mxu1 %v2665_v51 }
 0x11f   : > { %1660 = vmatpush1.bf16.msra.mxu0 %v2668_v53  ;;  %1579 = vmatprep.subr.bf16.mxu1 %v2673_v54 }
 0x120   : > { %1661 = vmatprep.subr.bf16.mxu0 %v2676_v55 }
 0x122   : > { %1580 = vmatpush1.bf16.msra.mxu1 %v2671_v56 }
 0x123   : > { %1662 = vmatpush1.bf16.msra.mxu0 %v2674_v57  ;;  %1581 = vmatprep.subr.bf16.mxu1 %v2679_v58 }
 0x124   : > { %1663 = vmatprep.subr.bf16.mxu0 %v2682_v59 }
 0x126   : > { %1582 = vmatpush1.bf16.msra.mxu1 %v2677_v60 }
 0x127   : > { %1664 = vmatpush1.bf16.msra.mxu0 %v2680_v61  ;;  %1583 = vmatprep.subr.bf16.mxu1 %v2685_v62  ;;  %v1984_v62 = vld [vmem:[%s1983_s20] sm:$0xff] }
 0x128   : > { %1665 = vmatprep.subr.bf16.mxu0 %v2688_v63 }
 0x12a   : > { %1584 = vmatpush1.bf16.msra.mxu1 %v2683_v0 }
 0x12b   : > { %1666 = vmatpush1.bf16.msra.mxu0 %v2686_v1  ;;  %1585 = vmatprep.subr.bf16.mxu1 %v2691_v2  ;;  %v1985_v1 = vld [vmem:[%s1983_s20 + $0x8] sm:$0xff] }
 0x12c   : > { %1667 = vmatprep.subr.bf16.mxu0 %v2694_v3 }
 0x12e   : > { %1586 = vmatpush1.bf16.msra.mxu1 %v2689_v4 }
 0x12f   : > { %1668 = vmatpush1.bf16.msra.mxu0 %v2692_v5  ;;  %1587 = vmatprep.subr.bf16.mxu1 %v2697_v6 }
 0x130   : > { %1669 = vmatprep.subr.bf16.mxu0 %v2700_v7 }
 0x132   : > { %1588 = vmatpush1.bf16.msra.mxu1 %v2695_v10 }
 0x133   : > { %1670 = vmatpush1.bf16.msra.mxu0 %v2698_v11 }
 0x134   : > { %1704 = vmatprep.subr.bf16.mxu0 %v2703_v12 }
 0x135   : > { %1590 = vmatmul.mubr.bf16.vlgmr.msra.gmra.mrb[4].mxu1 %v3174_v9 }
 0x136   : > { %1672 = vmatmul.mubr.bf16.vlgmr.msra.gmra.mrb[4].mxu0 %v3174_v9 }
 0x137   : > { %1705 = vmatpush1.bf16.msra.mxu0 %v2701_v13  ;;  %1736 = vmatprep.mubr.bf16.mxu0 %v2878_v16 }
 0x138   : > { %1706 = vmatprep.subr.bf16.mxu0 %v2706_v14 }
 0x13b   : > { %1707 = vmatpush1.bf16.msra.mxu0 %v2704_v15 }
 0x13e   : > { %2319 = vmatmul.mubr.msk.bf16.vlgmr.msra.gmra.mrb[8].mxu0 %vm1700_vm0, %v277_v18 }
 0x188   : > { %v1468_v19 = vpop.f32.mrb[0].mxu1 }
 0x189   : > { %v1509_v20 = vpop.f32.mrb[0].mxu0  ;;  %v1470_v21 = vpop.f32.mrb[1].mxu1 }
 0x18a   : > { %v1510_v8 = vadd.f32 %v1509_v20, %v1468_v19  ;;  %v1511_v22 = vpop.f32.mrb[1].mxu0  ;;  %v1472_v9 = vpop.f32.mrb[2].mxu1 }
 0x18b   : > { %v1512_v23 = vadd.f32 %v1511_v22, %v1470_v21  ;;  %v1513_v24 = vpop.f32.mrb[2].mxu0  ;;  %v1473_v25 = vpop.f32.mrb[3].mxu1 }
 0x18c   : > { %v1514_v52 = vpop.f32.mrb[3].mxu0 }
 0x18d   : > { %1809 = vmatprep.mubr.f32.mxu1 %v1512_v23 }
 0x208   : > { %v1591_v26 = vpop.f32.mrb[4].mxu1 }
 0x209   : > { %v1673_v27 = vpop.f32.mrb[4].mxu0  ;;  %v1593_v28 = vpop.f32.mrb[5].mxu1 }
 0x20a   : > { %v1675_v29 = vpop.f32.mrb[5].mxu0  ;;  %v1595_v30 = vpop.f32.mrb[6].mxu1  ;;  %1745 = vmatprep.subr.mxu1 %v1593_v28 }
 0x20b   : > { %v1677_v31 = vpop.f32.mrb[6].mxu0  ;;  %v1596_v32 = vpop.f32.mrb[7].mxu1  ;;  %1746 = vmatpush1.xpose.msra.mxu1 %v1591_v26 }
 0x20c   : > { %v1678_v33 = vpop.f32.mrb[7].mxu0 }
 0x20e   : > { %1810 = vmatmul.mubr.f32.vlgmr.msra.gmra.mrb[8].mxu1 %v1510_v8 }
 0x211   : > { %v1738_v34 = vpop.f32.mrb[8].mxu0 }
 0x212   : > { %v1740_v35 = vpop.f32.mrb[9].mxu0 }
 0x213   : > { %1816 = vmatprep.subr.mxu1 %v1740_v35  ;;  %v1742_v36 = vpop.f32.mrb[10].mxu0  ;;  %1880 = vmatprep.mubr.f32.mxu1 %v1740_v35 }
 0x214   : > { %1817 = vmatpush1.xpose.msra.mxu1 %v1738_v34  ;;  %v1743_v37 = vpop.f32.mrb[11].mxu0 }
 0x215   : > { %1908 = vmatprep.subr.mxu1 %v1675_v29 }
 0x217   : > { %1881 = vmatmul.mubr.f32.vlgmr.msra.gmra.mrb[10].mxu1 %v1738_v34 }
 0x218   : > { %1909 = vmatpush1.msra.mxu1 %v1673_v27  ;;  %1972 = vmatprep.mubr.f32.mxu1 %v2879_v49 }
 0x2e1   : > { %v1811_v38 = vpop.f32.mrb[8].mxu1 }
 0x2e2   : > { %v1815_v39 = vmul.f32 0.0625, %v1811_v38  ;;  %v1813_v40 = vpop.f32.mrb[9].mxu1 }
 0x2e4   : > { %v1888_v41 = vmul.f32 1.442695, %v1815_v39 }
 0x2e6   : > { %2707 = vpow2.f32 %v1888_v41 }
 0x2ea   : > { %v1882_v42 = vpop.f32.mrb[10].mxu1 }
 0x2eb   : > { %v1884_v43 = vpop.f32.mrb[11].mxu1  ;;  %v1886_v44 = vmul.f32 0.0625, %v1882_v42 }
 0x2ed   : > { %v1887_v45 = vmax.f32 %v1886_v44, 0.0 }
 0x2f0   : > { %v2708_v46 = vpop.eup %2707 }
 0x2f1   : > { %v1890_v47 = vmul.f32 %v2708_v46, %v1887_v45 }
 0x2f3   : > { %v1892_v48 = vsel %vm1891_vm1, %v1890_v47, 0.0 }
 0x2f4   : > { %1893 = vadd.xlane.f32.xlu0 %v1892_v48 }
 0x381   : > { %v1894_v50 = vpop.xlane.xlu0 %1893 }
 0x382   : > { %v1895_v51 = vrot.slane %v1894_v50, 4 }
 0x384   : > { %v1896_v53 = vadd.f32 %v1895_v51, %v1894_v50 }
 0x386   : > { %v1897_v54 = vrot.slane %v1896_v53, 2 }
 0x388   : > { %v1898_v55 = vadd.f32 %v1897_v54, %v1896_v53 }
 0x38a   : > { %v1899_v56 = vrot.slane %v1898_v55, 1 }
 0x38c   : > { %v1900_v57 = vadd.f32 %v1899_v56, %v1898_v55 }
 0x38e   : > { %2343 = vpush %v1900_v57 }
 0x3bf   : > { %s2344_s6 = spop %2343 }
 0x3c0   : > { %v1902_v58 = vstv %s2344_s6 }
 0x3c1   : > { %2709 = vrcp.f32 %v1902_v58 }
 0x3cb   : > { %v2710_v59 = vpop.eup %2709 }
 0x3cc   : > { %v1904_v60 = vmul.f32 %v2710_v59, %v1890_v47 }
 0x3ce   : > { %2320 = vmatmul.mubr.msk.f32.vlgmr.msra.gmra.mrb[12].mxu1 %vm1891_vm1, %v1904_v60 }
 0x4a1   : > { %v1974_v61 = vpop.f32.mrb[12].mxu1 }
 0x4a2   : > { %v1986_v63 = vmul.f32 0.1, %v1974_v61  ;;  %v1976_v0 = vpop.f32.mrb[13].mxu1 }
 0x4a3   : > { %v1987_v2 = vmul.f32 0.1, %v1976_v0 }
 0x4a4   : > { %v1988_v3 = vadd.f32 %v1986_v63, %v1984_v62 }
 0x4a5   : > { %v1989_v4 = vadd.f32 %v1987_v2, %v1985_v1 }
 0x4a6   : > { %1990 = vst [vmem:[%s265_s26] sm:$0xff] %v1988_v3 }
 0x4a7   : > { %1991 = vst [vmem:[%s265_s26 + $0x8] sm:$0xff] %v1989_v4 }
 0x4a8   : > { %2812 = shalt.err (!%p2809_p5)
}
 0x4a9   : > { %s2813_s21 = scalar_lea.hbm %s3329_s23, 256  ;;  %s2817_s6 = scalar_lea.hbm %s3377_s4, 512 }
 0x4aa   : > { %p2814_p11 = scmp.ne.s32.totalorder %s3329_s23, %s2813_s21  ;;  %p2818_p4 = scmp.lt.u32.totalorder %s3329_s23, %s3377_s4 }
 0x4ab   : > { %p2819_p10 = scmp.lt.u32.totalorder %s2817_s6, %s2813_s21  ;;  %p2821_p7 = scmp.lt.u32.totalorder %s2813_s21, %s3329_s23 }
 0x4ac   : > { %p2815_p9 = pnand %p2814_p11, %p3394_p12 }
 0x4ad   : > { %p2820_p13 = por %p2819_p10, %p2818_p4 }
 0x4ae   : > { %p2816_p8 = pneg %p2815_p9 }
 0x4af   : > { %p2822_p2 = por %p2821_p7, %p2820_p13 }
 0x4b1   : > { %p2823_p6 = pnand %p2822_p2, %p2816_p8 }
 0x4b3   : > { %2826 = shalt.err (!%p2823_p6)
}
 0x4b4   : > { %2353 = dma.vmem_to_hbm [thread:$0]  (%p3394_p12), %s3331_s2, 256, %s3329_s23, %s1993_s29  }
 0x4b5 PF: > { %s2019_s13 = sand.u32 1, %s2857_s15   ;;  %p3395_p0 = scmp.ne.s32.totalorder %s3387_s30, 0 }
 0x4b6   : > { %p3396_p3 = scmp.ge.s32.totalorder %s2869_s18, 2  ;;  %s2020_s12 = scalar_lea.sflag [#allocation4], %s2019_s13 }
 0x4b8   : > { %p2367_p1 = pnand %p3396_p3, %p3395_p0 }
 0x4ba   : > { %2852 = dma.done.wait (!%p2367_p1), %s2020_s12, 256  }
 0x4bb   : > { %2854 = vsyncadd (!%p2367_p1), %s2020_s12, 4294967040  ;;  %p18_p5 = scmp.ge.s32.totalorder %s2927_s19, 4   ;;  %s3397_s15 = smov %s2861_s16 }
 0x4bc   : > { %s3398_s16 = smov %s2865_s17  ;;  %s3399_s17 = smov %s2938_s22 }
 0x4bd   : > { %s3400_s18 = smov %s2927_s19  ;;  %20 = sbr.rel (!%p18_p5) target bundleno = 8 (0x8), region = 98 }
 0x4c4   :  { %2025 = vsyncpa [#allocation3], 1 }
 0x4c5   :  { %2027 = vsyncpa [#allocation3 + $0x1], 1 }
 0x4c6   :  { %2028 = vsyncpa [#allocation6], 1 }
 0x4c7   :  { %2030 = vsyncpa [#allocation6 + $0x1], 1 }
 0x4c8   :  { %2031 = vsyncpa [#allocation4], 1 }
 0x4c9   :  { %2033 = vsyncpa [#allocation4 + $0x1], 1 }

</bundles_post_ra>
